<compile_context>
chip_gen: v6e
topology: v6e:2x2x1
jax: 0.10.0
libtpu: 0.0.40
codegen_flags: <defaults>
</compile_context>

<pallas_src>
import math

import jax
import jax.numpy as jnp
from jax.experimental import pallas as pl
from jax.experimental.pallas import tpu as pltpu


# ------------------------------ small helpers --------------------------------
def _round_up(x, m):
    return -(-x // m) * m


def _tpu_generation():
    try:
        kind = jax.devices()[0].device_kind.lower()
    except Exception:
        return None
    if "v4" in kind:
        return 4
    if "v5" in kind:
        return 5
    if "v6" in kind:
        return 6
    if "v7" in kind or "7x" in kind or "tpu7" in kind:
        return 7
    return None


def _default_vmem_limit_bytes():
    gen = _tpu_generation()
    if gen == 7:
        return 48 * 1024 * 1024      # 64 MiB physical per TC -> leave headroom
    if gen in (5, 6):
        return 64 * 1024 * 1024      # 128 MiB physical
    return None                      # unknown chip: keep compiler default


def _auto_elementwise_dtype(weight_dtype):
    # bf16 VPU exists on v6e / v7x only; v5e (and unknown) keep f32 elementwise.
    if weight_dtype == jnp.bfloat16 and _tpu_generation() in (6, 7):
        return jnp.bfloat16
    return jnp.float32


def _select_tile_b(B, sublane, max_tb):
    """Batch tile: one full block for tiny B, else >= 2 blocks (v7x megacore),
    capped at max_tb to amortize the per-grid-step overhead."""
    if B <= 2 * sublane:                     # genuinely small: single block
        return B
    tb = _round_up(_round_up(B, 2) // 2, sublane)     # ~ceil(B/2), aligned
    tb = min(tb, max(_round_up(max_tb, sublane), sublane))
    return B if tb >= B else tb


# ----------------------------- Pallas kernel ----------------------------------
def _clas_decoder_kernel(
    obs_ref,              # (TB, obs_dim)       f32
    lat_ref,              # (TB, latent_dim)    f32
    w1o_ref, w1l_ref,     # (obs_dim, H), (latent_dim, H)   weight dtype
    b1_ref,               # (1, H)              elementwise dtype
    w2_ref, b2_ref,       # (H, H), (1, H)
    w3_ref, b3_ref,       # (H, H), (1, H)
    wh_ref, bh_ref,       # (H, A2p), (1, A2p)  fused+padded mu|logvar head
    lo_ref, hi_ref,       # (1, A2p)            per-column clamp bounds
    out_ref,              # (TB, A2p)
):
    wdt = w2_ref.dtype    # MXU operand dtype (bf16 or f32); accumulation is f32
    ew = b1_ref.dtype     # elementwise dtype (bf16 on v6e/v7x bf16 path, else f32)

    # Layer 1 (concat-free split-weight form) + ReLU
    h = (jnp.dot(obs_ref[...].astype(wdt), w1o_ref[...],
                 preferred_element_type=jnp.float32)
         + jnp.dot(lat_ref[...].astype(wdt), w1l_ref[...],
                   preferred_element_type=jnp.float32)).astype(ew) + b1_ref[...]
    h = jnp.maximum(h, 0.0)

    # Layer 2 + ReLU
    h = jnp.dot(h.astype(wdt), w2_ref[...],
                preferred_element_type=jnp.float32).astype(ew) + b2_ref[...]
    h = jnp.maximum(h, 0.0)

    # Layer 3 + ReLU
    h = jnp.dot(h.astype(wdt), w3_ref[...],
                preferred_element_type=jnp.float32).astype(ew) + b3_ref[...]
    h = jnp.maximum(h, 0.0)

    # Fused mu|logvar head (single MXU pass, lane-dense padded output).
    head = jnp.dot(h.astype(wdt), wh_ref[...],
                   preferred_element_type=jnp.float32).astype(ew) + bh_ref[...]

    # Per-column clamp via precomputed bound rows:
    #   mu columns:     lo=-inf, hi=+inf (untouched)
    #   logvar columns: lo=-10,  hi=+2
    #   zero-pad lanes: lo=-inf, hi=+inf (stay exactly 0: w/b padding is zero)
    head = jnp.minimum(jnp.maximum(head, lo_ref[...]), hi_ref[...])

    out_ref[...] = head.astype(out_ref.dtype)


# -------------------------------- wrapper --------------------------------------
def clas_decoder_forward(obs, latent_action, params, *, block_b=None,
                         max_block_b=2048, elementwise_dtype=None,
                         out_dtype=jnp.float32, vmem_limit_bytes=None):
    """Pallas implementation of CLASDecoder.forward.

    Args:
      obs:            (B, obs_dim) float32
      latent_action:  (B, latent_dim) float32  (already tanh-squashed)
      params:         dict from init_clas_decoder_params
      block_b:        optional explicit batch tile (rows per grid step)
      max_block_b:    cap for the auto-selected batch tile
      elementwise_dtype: override for bias/ReLU/clamp dtype (auto: bf16 on
                      v6e/v7x when weights are bf16, else f32)
      out_dtype:      kernel output dtype (set bf16 on v5e to halve writeback)
    Returns:
      (mu, logvar), each (B, action_dim) in `out_dtype`.
    """
    B, obs_dim = obs.shape
    latent_dim = latent_action.shape[1]
    H = params["w2"].shape[0]
    A = int(params["action_dim"])
    A2p = params["w_head"].shape[1]                 # lane-padded head width

    wdt = params["w2"].dtype
    ew = elementwise_dtype if elementwise_dtype is not None else _auto_elementwise_dtype(wdt)
    sublane = 16 if wdt == jnp.bfloat16 else 8      # packed bf16 vregs

    # ---- batch tile selection (no input padding; masked partial tail) ----
    if block_b is not None:
        TB = min(int(block_b), B)
        if TB < B:
            TB = _round_up(TB, sublane)
            if TB >= B:
                TB = B
    else:
        TB = _select_tile_b(B, sublane, max_block_b)
    n_blocks = pl.cdiv(B, TB)

    # Tiny (1, X) rows: cast once to the elementwise dtype here.
    b1 = params["b1"].astype(ew)
    b2 = params["b2"].astype(ew)
    b3 = params["b3"].astype(ew)
    bh = params["b_head"].astype(ew)
    lo = params["head_lo"].astype(ew)
    hi = params["head_hi"].astype(ew)

    operands = (
        obs, latent_action,
        params["w1_obs"], params["w1_lat"], b1,
        params["w2"], b2,
        params["w3"], b3,
        params["w_head"], bh, lo, hi,
    )

    # Activations tiled over the batch; everything else VMEM-resident
    # (constant block index -> DMA'd once, reused for every grid step).
    in_specs = [
        pl.BlockSpec((TB, obs_dim), lambda i: (i, 0)),
        pl.BlockSpec((TB, latent_dim), lambda i: (i, 0)),
    ] + [pl.BlockSpec(op.shape, lambda i: (0, 0)) for op in operands[2:]]
    out_spec = pl.BlockSpec((TB, A2p), lambda i: (i, 0))

    flops = 2 * B * (obs_dim * H + latent_dim * H + 2 * H * H + H * A2p)
    bytes_accessed = sum(int(op.size) * op.dtype.itemsize for op in operands)
    bytes_accessed += B * A2p * jnp.dtype(out_dtype).itemsize

    if vmem_limit_bytes is None:
        vmem_limit_bytes = _default_vmem_limit_bytes()

    out = pl.pallas_call(
        _clas_decoder_kernel,
        out_shape=jax.ShapeDtypeStruct((B, A2p), out_dtype),
        grid=(n_blocks,),
        in_specs=in_specs,
        out_specs=out_spec,
        compiler_params=pltpu.CompilerParams(
            dimension_semantics=("parallel",),       # megacore sharding on v7x
            vmem_limit_bytes=vmem_limit_bytes,
        ),
        cost_estimate=pl.CostEstimate(
            flops=int(flops), transcendentals=0,
            bytes_accessed=int(bytes_accessed)),
    )(*operands)

    mu = out[:, :A]
    logvar = out[:, A:2 * A]
    return mu, logvar


# ----------------------------- parameter init ----------------------------------
def _linear_init(key, fan_in, fan_out, bias_const=None):
    """torch.nn.Linear default init: U(-1/sqrt(fan_in), 1/sqrt(fan_in))."""
    kw, kb = jax.random.split(key)
    bound = 1.0 / math.sqrt(fan_in)
    w = jax.random.uniform(kw, (fan_in, fan_out), jnp.float32, -bound, bound)
    if bias_const is None:
        b = jax.random.uniform(kb, (1, fan_out), jnp.float32, -bound, bound)
    else:
        b = jnp.full((1, fan_out), bias_const, jnp.float32)
    return w, b


def init_clas_decoder_params(key, obs_dim, latent_dim, action_dim, hidden_dim=256,
                             weight_dtype=jnp.float32, head_pad=128):
    """Kernel-layout params matching the torch module's initialization.

    w1 is split into (w1_obs, w1_lat); mu/logvar heads are fused into one
    (H, 2A) matrix, zero-padded on the lane axis to a multiple of `head_pad`
    (lane-dense output writeback; set head_pad=8 on v5e to shrink output HBM
    bytes).  head_lo / head_hi are per-column clamp bounds used by the kernel.
    """
    input_dim = obs_dim + latent_dim
    k1, k2, k3, k4, k5 = jax.random.split(key, 5)
    w1, b1 = _linear_init(k1, input_dim, hidden_dim)
    w2, b2 = _linear_init(k2, hidden_dim, hidden_dim)
    w3, b3 = _linear_init(k3, hidden_dim, hidden_dim)
    wmu, bmu = _linear_init(k4, hidden_dim, action_dim)
    # nn.init.constant_(self.logvar_layer.bias, -5.0)
    wlv, blv = _linear_init(k5, hidden_dim, action_dim, bias_const=-5.0)

    w_head = jnp.concatenate([wmu, wlv], axis=1)    # (H, 2A)
    b_head = jnp.concatenate([bmu, blv], axis=1)    # (1, 2A)
    a2 = 2 * action_dim
    a2p = max(head_pad, _round_up(a2, head_pad))
    if a2p != a2:
        # NOTE: the pad MUST stay zero -- padded lanes flow through the kernel
        # unclamped (lo=-inf / hi=+inf) and are sliced off in the wrapper.
        w_head = jnp.pad(w_head, ((0, 0), (0, a2p - a2)))
        b_head = jnp.pad(b_head, ((0, 0), (0, a2p - a2)))

    col = jnp.arange(a2p)
    is_logvar = (col >= action_dim) & (col < a2)
    head_lo = jnp.where(is_logvar, -10.0, -jnp.inf).astype(jnp.float32)[None, :]
    head_hi = jnp.where(is_logvar, 2.0, jnp.inf).astype(jnp.float32)[None, :]

    return {
        "w1_obs": w1[:obs_dim].astype(weight_dtype),
        "w1_lat": w1[obs_dim:].astype(weight_dtype),
        "b1": b1,
        "w2": w2.astype(weight_dtype), "b2": b2,
        "w3": w3.astype(weight_dtype), "b3": b3,
        "w_head": w_head.astype(weight_dtype),
        "b_head": b_head,
        "head_lo": head_lo, "head_hi": head_hi,
        "action_dim": action_dim,
    }


def cast_params_weights(params, dtype):
    """Cast matmul weights (not biases / bounds) to `dtype` (e.g. bf16)."""
    out = dict(params)
    for k in ("w1_obs", "w1_lat", "w2", "w3", "w_head"):
        out[k] = params[k].astype(dtype)
    return out


# ---------------------------- reference (pure JAX) ------------------------------
def _reference_forward(obs, latent_action, p):
    f32 = jnp.float32
    A = int(p["action_dim"])
    h = jnp.maximum(obs @ p["w1_obs"].astype(f32)
                    + latent_action @ p["w1_lat"].astype(f32) + p["b1"], 0.0)
    h = jnp.maximum(h @ p["w2"].astype(f32) + p["b2"], 0.0)
    h = jnp.maximum(h @ p["w3"].astype(f32) + p["b3"], 0.0)
    head = h @ p["w_head"].astype(f32) + p["b_head"]
    mu = head[:, :A]
    logvar = jnp.clip(head[:, A:2 * A], -10.0, 2.0)
    return mu, logvar


# ------------------------------------ main --------------------------------------
if __name__ == "__main__":
    key = jax.random.PRNGKey(0)
    k_p1, k_p2, k_o1, k_l1, k_o2, k_l2, k_o3, k_l3 = jax.random.split(key, 8)

    # ---- 1) small module-consistent shapes, f32 weights, single block ----
    B, OBS_DIM, LATENT_DIM, ACTION_DIM, HIDDEN_DIM = 8, 24, 8, 8, 32
    obs = jax.random.normal(k_o1, (B, OBS_DIM), jnp.float32)
    lat = jnp.tanh(jax.random.normal(k_l1, (B, LATENT_DIM), jnp.float32))
    params_small = init_clas_decoder_params(k_p1, OBS_DIM, LATENT_DIM,
                                            ACTION_DIM, HIDDEN_DIM)

    mu, logvar = clas_decoder_forward(obs, lat, params_small)
    jax.block_until_ready((mu, logvar))
    mu_ref, lv_ref = _reference_forward(obs, lat, params_small)
    assert mu.shape == (B, ACTION_DIM) and logvar.shape == (B, ACTION_DIM)
    assert jnp.allclose(mu, mu_ref, atol=2e-2, rtol=1e-2)
    assert jnp.allclose(logvar, lv_ref, atol=2e-2, rtol=1e-2)

    # ---- 2) module-default hidden=256, B=1000: >=2 grid blocks (megacore),
    #         masked partial tail block (no wrapper-side jnp.pad) ----
    H2, B2 = 256, 1000
    params_big = init_clas_decoder_params(k_p2, OBS_DIM, LATENT_DIM, ACTION_DIM, H2)
    obs2 = jax.random.normal(k_o2, (B2, OBS_DIM), jnp.float32)
    lat2 = jnp.tanh(jax.random.normal(k_l2, (B2, LATENT_DIM), jnp.float32))
    mu2, lv2 = clas_decoder_forward(obs2, lat2, params_big)
    jax.block_until_ready((mu2, lv2))
    mu2_ref, lv2_ref = _reference_forward(obs2, lat2, params_big)
    assert mu2.shape == (B2, ACTION_DIM) and lv2.shape == (B2, ACTION_DIM)
    assert jnp.allclose(mu2, mu2_ref, atol=2e-2, rtol=1e-2)
    assert jnp.allclose(lv2, lv2_ref, atol=2e-2, rtol=1e-2)

    # ---- 3) bf16 weights (MXU-native) + tiled batch; bf16 elementwise kicks
    #         in automatically on v6e/v7x, f32 elementwise stays on v5e ----
    params_bf16 = cast_params_weights(params_big, jnp.bfloat16)
    B3 = 200
    obs3 = jax.random.normal(k_o3, (B3, OBS_DIM), jnp.float32)
    lat3 = jnp.tanh(jax.random.normal(k_l3, (B3, LATENT_DIM), jnp.float32))
    mu3, lv3 = clas_decoder_forward(obs3, lat3, params_bf16)
    jax.block_until_ready((mu3, lv3))
    mu3_ref, lv3_ref = _reference_forward(obs3, lat3, params_big)
    assert mu3.shape == (B3, ACTION_DIM) and lv3.shape == (B3, ACTION_DIM)
    assert jnp.all(jnp.isfinite(mu3)) and jnp.all(jnp.isfinite(lv3))
    assert jnp.allclose(mu3, mu3_ref, atol=1e-1, rtol=5e-2)
    assert jnp.allclose(lv3, lv3_ref, atol=2e-1, rtol=5e-2)

    print("KERNEL_OK")
</pallas_src>

<mosaic_0001>
module attributes {stable_mosaic.version = 11 : i64} {
  func.func @_clas_decoder_kernel(%arg0: i32, %arg1: memref<8x24xf32, #tpu.memory_space<vmem>>, %arg2: memref<8x8xf32, #tpu.memory_space<vmem>>, %arg3: memref<24x32xf32, #tpu.memory_space<vmem>>, %arg4: memref<8x32xf32, #tpu.memory_space<vmem>>, %arg5: memref<1x32xf32, #tpu.memory_space<vmem>>, %arg6: memref<32x32xf32, #tpu.memory_space<vmem>>, %arg7: memref<1x32xf32, #tpu.memory_space<vmem>>, %arg8: memref<32x32xf32, #tpu.memory_space<vmem>>, %arg9: memref<1x32xf32, #tpu.memory_space<vmem>>, %arg10: memref<32x128xf32, #tpu.memory_space<vmem>>, %arg11: memref<1x128xf32, #tpu.memory_space<vmem>>, %arg12: memref<1x128xf32, #tpu.memory_space<vmem>>, %arg13: memref<1x128xf32, #tpu.memory_space<vmem>>, %arg14: memref<8x128xf32, #tpu.memory_space<vmem>>) attributes {dimension_semantics = [#tpu.dimension_semantics<parallel>], iteration_bounds = array<i64: 1>, scalar_prefetch = 0 : i64, scratch_operands = 0 : i64, tpu.core_type = #tpu.core_type<tc>, window_params = [{transform_indices = @transform_0, window_bounds = array<i64: 8, 24>}, {transform_indices = @transform_1, window_bounds = array<i64: 8, 8>}, {pipeline_mode = #tpu.pipeline_mode<synchronous>, transform_indices = @transform_2, window_bounds = array<i64: 24, 32>}, {pipeline_mode = #tpu.pipeline_mode<synchronous>, transform_indices = @transform_3, window_bounds = array<i64: 8, 32>}, {pipeline_mode = #tpu.pipeline_mode<synchronous>, transform_indices = @transform_4, window_bounds = array<i64: 1, 32>}, {pipeline_mode = #tpu.pipeline_mode<synchronous>, transform_indices = @transform_5, window_bounds = array<i64: 32, 32>}, {pipeline_mode = #tpu.pipeline_mode<synchronous>, transform_indices = @transform_6, window_bounds = array<i64: 1, 32>}, {pipeline_mode = #tpu.pipeline_mode<synchronous>, transform_indices = @transform_7, window_bounds = array<i64: 32, 32>}, {pipeline_mode = #tpu.pipeline_mode<synchronous>, transform_indices = @transform_8, window_bounds = array<i64: 1, 32>}, {pipeline_mode = #tpu.pipeline_mode<synchronous>, transform_indices = @transform_9, window_bounds = array<i64: 32, 128>}, {pipeline_mode = #tpu.pipeline_mode<synchronous>, transform_indices = @transform_10, window_bounds = array<i64: 1, 128>}, {pipeline_mode = #tpu.pipeline_mode<synchronous>, transform_indices = @transform_11, window_bounds = array<i64: 1, 128>}, {pipeline_mode = #tpu.pipeline_mode<synchronous>, transform_indices = @transform_12, window_bounds = array<i64: 1, 128>}, {transform_indices = @transform_13, window_bounds = array<i64: 8, 128>}]} {
    %c0 = arith.constant 0 : index
    %c0_0 = arith.constant 0 : index
    %0 = vector.load %arg1[%c0, %c0_0] : memref<8x24xf32, #tpu.memory_space<vmem>>, vector<8x24xf32>
    %c0_1 = arith.constant 0 : index
    %c0_2 = arith.constant 0 : index
    %1 = vector.load %arg3[%c0_1, %c0_2] : memref<24x32xf32, #tpu.memory_space<vmem>>, vector<24x32xf32>
    %cst = arith.constant dense<0.000000e+00> : vector<8x32xf32>
    %2 = tpu.matmul %0, %1, %cst {dimension_numbers = #tpu.dot_dimension_numbers<[1], [0], [0], [1], [0, 0, 1, 1], [], []>} : vector<8x24xf32>, vector<24x32xf32>, vector<8x32xf32> -> vector<8x32xf32>
    %c0_3 = arith.constant 0 : index
    %c0_4 = arith.constant 0 : index
    %3 = vector.load %arg2[%c0_3, %c0_4] : memref<8x8xf32, #tpu.memory_space<vmem>>, vector<8x8xf32>
    %c0_5 = arith.constant 0 : index
    %c0_6 = arith.constant 0 : index
    %4 = vector.load %arg4[%c0_5, %c0_6] : memref<8x32xf32, #tpu.memory_space<vmem>>, vector<8x32xf32>
    %cst_7 = arith.constant dense<0.000000e+00> : vector<8x32xf32>
    %5 = tpu.matmul %3, %4, %cst_7 {dimension_numbers = #tpu.dot_dimension_numbers<[1], [0], [0], [1], [0, 0, 1, 1], [], []>} : vector<8x8xf32>, vector<8x32xf32>, vector<8x32xf32> -> vector<8x32xf32>
    %6 = arith.addf %2, %5 : vector<8x32xf32>
    %c0_8 = arith.constant 0 : index
    %c0_9 = arith.constant 0 : index
    %7 = vector.load %arg5[%c0_8, %c0_9] : memref<1x32xf32, #tpu.memory_space<vmem>>, vector<1x32xf32>
    %8 = vector.broadcast %7 : vector<1x32xf32> to vector<8x32xf32>
    %9 = arith.addf %6, %8 : vector<8x32xf32>
    %cst_10 = arith.constant 0.000000e+00 : f32
    %10 = vector.broadcast %cst_10 : f32 to vector<8x32xf32>
    %11 = arith.maximumf %9, %10 : vector<8x32xf32>
    %c0_11 = arith.constant 0 : index
    %c0_12 = arith.constant 0 : index
    %12 = vector.load %arg6[%c0_11, %c0_12] : memref<32x32xf32, #tpu.memory_space<vmem>>, vector<32x32xf32>
    %cst_13 = arith.constant dense<0.000000e+00> : vector<8x32xf32>
    %13 = tpu.matmul %11, %12, %cst_13 {dimension_numbers = #tpu.dot_dimension_numbers<[1], [0], [0], [1], [0, 0, 1, 1], [], []>} : vector<8x32xf32>, vector<32x32xf32>, vector<8x32xf32> -> vector<8x32xf32>
    %c0_14 = arith.constant 0 : index
    %c0_15 = arith.constant 0 : index
    %14 = vector.load %arg7[%c0_14, %c0_15] : memref<1x32xf32, #tpu.memory_space<vmem>>, vector<1x32xf32>
    %15 = vector.broadcast %14 : vector<1x32xf32> to vector<8x32xf32>
    %16 = arith.addf %13, %15 : vector<8x32xf32>
    %cst_16 = arith.constant 0.000000e+00 : f32
    %17 = vector.broadcast %cst_16 : f32 to vector<8x32xf32>
    %18 = arith.maximumf %16, %17 : vector<8x32xf32>
    %c0_17 = arith.constant 0 : index
    %c0_18 = arith.constant 0 : index
    %19 = vector.load %arg8[%c0_17, %c0_18] : memref<32x32xf32, #tpu.memory_space<vmem>>, vector<32x32xf32>
    %cst_19 = arith.constant dense<0.000000e+00> : vector<8x32xf32>
    %20 = tpu.matmul %18, %19, %cst_19 {dimension_numbers = #tpu.dot_dimension_numbers<[1], [0], [0], [1], [0, 0, 1, 1], [], []>} : vector<8x32xf32>, vector<32x32xf32>, vector<8x32xf32> -> vector<8x32xf32>
    %c0_20 = arith.constant 0 : index
    %c0_21 = arith.constant 0 : index
    %21 = vector.load %arg9[%c0_20, %c0_21] : memref<1x32xf32, #tpu.memory_space<vmem>>, vector<1x32xf32>
    %22 = vector.broadcast %21 : vector<1x32xf32> to vector<8x32xf32>
    %23 = arith.addf %20, %22 : vector<8x32xf32>
    %cst_22 = arith.constant 0.000000e+00 : f32
    %24 = vector.broadcast %cst_22 : f32 to vector<8x32xf32>
    %25 = arith.maximumf %23, %24 : vector<8x32xf32>
    %c0_23 = arith.constant 0 : index
    %c0_24 = arith.constant 0 : index
    %26 = vector.load %arg10[%c0_23, %c0_24] : memref<32x128xf32, #tpu.memory_space<vmem>>, vector<32x128xf32>
    %cst_25 = arith.constant dense<0.000000e+00> : vector<8x128xf32>
    %27 = tpu.matmul %25, %26, %cst_25 {dimension_numbers = #tpu.dot_dimension_numbers<[1], [0], [0], [1], [0, 0, 1, 1], [], []>} : vector<8x32xf32>, vector<32x128xf32>, vector<8x128xf32> -> vector<8x128xf32>
    %c0_26 = arith.constant 0 : index
    %c0_27 = arith.constant 0 : index
    %28 = vector.load %arg11[%c0_26, %c0_27] : memref<1x128xf32, #tpu.memory_space<vmem>>, vector<1x128xf32>
    %29 = vector.broadcast %28 : vector<1x128xf32> to vector<8x128xf32>
    %30 = arith.addf %27, %29 : vector<8x128xf32>
    %c0_28 = arith.constant 0 : index
    %c0_29 = arith.constant 0 : index
    %31 = vector.load %arg12[%c0_28, %c0_29] : memref<1x128xf32, #tpu.memory_space<vmem>>, vector<1x128xf32>
    %32 = vector.broadcast %31 : vector<1x128xf32> to vector<8x128xf32>
    %33 = arith.maximumf %30, %32 : vector<8x128xf32>
    %c0_30 = arith.constant 0 : index
    %c0_31 = arith.constant 0 : index
    %34 = vector.load %arg13[%c0_30, %c0_31] : memref<1x128xf32, #tpu.memory_space<vmem>>, vector<1x128xf32>
    %35 = vector.broadcast %34 : vector<1x128xf32> to vector<8x128xf32>
    %36 = arith.minimumf %33, %35 : vector<8x128xf32>
    %c0_32 = arith.constant 0 : index
    %c0_33 = arith.constant 0 : index
    %37 = vector.load %arg14[%c0_32, %c0_33] : memref<8x128xf32, #tpu.memory_space<vmem>>, vector<8x128xf32>
    tpu.vector_store %arg14[%c0_32, %c0_33], %36 {strides = array<i32>} : memref<8x128xf32, #tpu.memory_space<vmem>>, vector<8x128xf32>,
    return
  }
  func.func @transform_0(%arg0: i32) -> (i32, i32) {
    %c0_i32 = arith.constant 0 : i32
    %c0_i32_0 = arith.constant 0 : i32
    return %arg0, %c0_i32 : i32, i32
  }
  func.func @transform_1(%arg0: i32) -> (i32, i32) {
    %c0_i32 = arith.constant 0 : i32
    %c0_i32_0 = arith.constant 0 : i32
    return %arg0, %c0_i32 : i32, i32
  }
  func.func @transform_2(%arg0: i32) -> (i32, i32) {
    %c0_i32 = arith.constant 0 : i32
    %c0_i32_0 = arith.constant 0 : i32
    %c0_i32_1 = arith.constant 0 : i32
    return %c0_i32, %c0_i32_0 : i32, i32
  }
  func.func @transform_3(%arg0: i32) -> (i32, i32) {
    %c0_i32 = arith.constant 0 : i32
    %c0_i32_0 = arith.constant 0 : i32
    %c0_i32_1 = arith.constant 0 : i32
    return %c0_i32, %c0_i32_0 : i32, i32
  }
  func.func @transform_4(%arg0: i32) -> (i32, i32) {
    %c0_i32 = arith.constant 0 : i32
    %c0_i32_0 = arith.constant 0 : i32
    %c0_i32_1 = arith.constant 0 : i32
    return %c0_i32, %c0_i32_0 : i32, i32
  }
  func.func @transform_5(%arg0: i32) -> (i32, i32) {
    %c0_i32 = arith.constant 0 : i32
    %c0_i32_0 = arith.constant 0 : i32
    %c0_i32_1 = arith.constant 0 : i32
    return %c0_i32, %c0_i32_0 : i32, i32
  }
  func.func @transform_6(%arg0: i32) -> (i32, i32) {
    %c0_i32 = arith.constant 0 : i32
    %c0_i32_0 = arith.constant 0 : i32
    %c0_i32_1 = arith.constant 0 : i32
    return %c0_i32, %c0_i32_0 : i32, i32
  }
  func.func @transform_7(%arg0: i32) -> (i32, i32) {
    %c0_i32 = arith.constant 0 : i32
    %c0_i32_0 = arith.constant 0 : i32
    %c0_i32_1 = arith.constant 0 : i32
    return %c0_i32, %c0_i32_0 : i32, i32
  }
  func.func @transform_8(%arg0: i32) -> (i32, i32) {
    %c0_i32 = arith.constant 0 : i32
    %c0_i32_0 = arith.constant 0 : i32
    %c0_i32_1 = arith.constant 0 : i32
    return %c0_i32, %c0_i32_0 : i32, i32
  }
  func.func @transform_9(%arg0: i32) -> (i32, i32) {
    %c0_i32 = arith.constant 0 : i32
    %c0_i32_0 = arith.constant 0 : i32
    %c0_i32_1 = arith.constant 0 : i32
    return %c0_i32, %c0_i32_0 : i32, i32
  }
  func.func @transform_10(%arg0: i32) -> (i32, i32) {
    %c0_i32 = arith.constant 0 : i32
    %c0_i32_0 = arith.constant 0 : i32
    %c0_i32_1 = arith.constant 0 : i32
    return %c0_i32, %c0_i32_0 : i32, i32
  }
  func.func @transform_11(%arg0: i32) -> (i32, i32) {
    %c0_i32 = arith.constant 0 : i32
    %c0_i32_0 = arith.constant 0 : i32
    %c0_i32_1 = arith.constant 0 : i32
    return %c0_i32, %c0_i32_0 : i32, i32
  }
  func.func @transform_12(%arg0: i32) -> (i32, i32) {
    %c0_i32 = arith.constant 0 : i32
    %c0_i32_0 = arith.constant 0 : i32
    %c0_i32_1 = arith.constant 0 : i32
    return %c0_i32, %c0_i32_0 : i32, i32
  }
  func.func @transform_13(%arg0: i32) -> (i32, i32) {
    %c0_i32 = arith.constant 0 : i32
    %c0_i32_0 = arith.constant 0 : i32
    return %arg0, %c0_i32 : i32, i32
  }
}

</mosaic_0001>

<bundles_post_ra>
// kernel: tpu_custom_call.1
= control target key start
LH: loop header
LB: loop body
LE: loop exit
PB: predicated region body
PF: predicated region fallthrough
CT: control target
= control target key end

     0   :  { %18 = vsyncpa [#allocation3], 0  ;;  %s1013_s0 = inlined_call_operand.hbm [shape: f32[8,24], index: 0, kind: input, shape index: {}]   ;;  %s1014_s1 = inlined_call_operand.hbm [shape: f32[8,8], index: 1, kind: input, shape index: {}]   ;;  %s1015_s2 = inlined_call_operand.hbm [shape: f32[24,32], index: 2, kind: input, shape index: {}]   ;;  %s1016_s3 = inlined_call_operand.hbm [shape: f32[8,32], index: 3, kind: input, shape index: {}]   ;;  %s1017_s4 = inlined_call_operand.vmem [shape: f32[1,32], index: 4, kind: input, shape index: {}]   ;;  %s1018_s5 = inlined_call_operand.hbm [shape: f32[32,32], index: 5, kind: input, shape index: {}]   ;;  %s1019_s6 = inlined_call_operand.vmem [shape: f32[1,32], index: 6, kind: input, shape index: {}]   ;;  %s1020_s7 = inlined_call_operand.hbm [shape: f32[32,32], index: 7, kind: input, shape index: {}]   ;;  %s1021_s8 = inlined_call_operand.vmem [shape: f32[1,32], index: 8, kind: input, shape index: {}]   ;;  %s1022_s9 = inlined_call_operand.hbm [shape: f32[32,128], index: 9, kind: input, shape index: {}]   ;;  %s1023_s10 = inlined_call_operand.vmem [shape: f32[1,128], index: 10, kind: input, shape index: {}]   ;;  %s1024_s11 = inlined_call_operand.vmem [shape: f32[1,128], index: 11, kind: input, shape index: {}]   ;;  %s1025_s12 = inlined_call_operand.vmem [shape: f32[1,128], index: 12, kind: input, shape index: {}]   ;;  %s1026_s13 = inlined_call_operand.hbm [shape: f32[8,128], index: 13, kind: output, shape index: {}]  }
   0x1   :  { %19 = vsyncpa [#allocation6], 0 }
   0x2   :  { %20 = vsyncpa [#allocation9], 0 }
   0x3   :  { %21 = vsyncpa [#allocation12], 0 }
   0x4   :  { %22 = vsyncpa [#allocation4], 0  ;;  %s848_s25 = smov [#allocation5]   ;;  %s849_s27 = smov [#allocation8]  }
   0x5   :  { %s39_s26 = sshll.u32 %s848_s25, 4  ;;  %s61_s28 = sshll.u32 %s849_s27, 4  ;;  %s40_s26 = int_to_ptr.vmem [resolvable:$true] %s39_s26  ;;  %s62_s28 = int_to_ptr.vmem [resolvable:$true] %s61_s28 }
   0x6   :  { %s686_s29 = scalar_lea.vmem %s40_s26, 128  ;;  %p691_p1 = scmp.lt.s32.totalorder %s40_s26, %s40_s26 }
   0x7   :  { %p687_p0 = scmp.ne.s32.totalorder %s40_s26, %s686_s29  ;;  %p692_p2 = scmp.lt.s32.totalorder %s686_s29, %s686_s29 }
   0x9   :  { %p693_p3 = por %p692_p2, %p691_p1 }
   0xb   :  { %p694_p4 = pnand %p693_p3, %p687_p0 }
   0xd   :  { %697 = shalt.err (!%p694_p4)
}
   0xe   :  { %42 = dma.hbm_to_vmem [thread:$0]  %s1014_s1, 128, %s40_s26, [#allocation6]  }
   0xf   :  { %s706_s15 = scalar_lea.vmem %s62_s28, 128  ;;  %p711_p6 = scmp.lt.s32.totalorder %s62_s28, %s62_s28 }
  0x10   :  { %p707_p5 = scmp.ne.s32.totalorder %s62_s28, %s706_s15  ;;  %p712_p7 = scmp.lt.s32.totalorder %s706_s15, %s706_s15 }
  0x12   :  { %p713_p8 = por %p712_p7, %p711_p6 }
  0x14   :  { %p714_p9 = pnand %p713_p8, %p707_p5 }
  0x16   :  { %717 = shalt.err (!%p714_p9)
}
  0x17   :  { %64 = dma.hbm_to_vmem [thread:$0]  %s1016_s3, 128, %s62_s28, [#allocation9]  }
  0x18   :  { %s850_s18 = smov [#allocation11]   ;;  %s851_s20 = smov [#allocation2]  }
  0x19   :  { %s86_s19 = sshll.u32 %s850_s18, 4  ;;  %s29_s21 = sshll.u32 %s851_s20, 4  ;;  %s87_s19 = int_to_ptr.vmem [resolvable:$true] %s86_s19  ;;  %s30_s21 = int_to_ptr.vmem [resolvable:$true] %s29_s21 }
  0x1a   :  { %s726_s22 = scalar_lea.vmem %s87_s19, 512  ;;  %p731_p11 = scmp.lt.s32.totalorder %s87_s19, %s87_s19 }
  0x1b   :  { %p727_p10 = scmp.ne.s32.totalorder %s87_s19, %s726_s22  ;;  %p732_p12 = scmp.lt.s32.totalorder %s726_s22, %s726_s22 }
  0x1d   :  { %p733_p13 = por %p732_p12, %p731_p11 }
  0x1f   :  { %p734_p0 = pnand %p733_p13, %p727_p10 }
  0x21   :  { %737 = shalt.err (!%p734_p0)
}
  0x22   :  { %s852_s1 = smov 128   ;;  %s853_s23 = smov 8  }
  0x23   :  { %92 = dma.hbm_to_vmem [thread:$0]  %s1020_s7, 512, %s87_s19, [#allocation12], %s852_s1, %s852_s1, %s853_s23  }
  0x24   :  { %s746_s25 = scalar_lea.vmem %s30_s21, 128  ;;  %p751_p2 = scmp.lt.s32.totalorder %s30_s21, %s30_s21 }
  0x25   :  { %p747_p1 = scmp.ne.s32.totalorder %s30_s21, %s746_s25  ;;  %p752_p3 = scmp.lt.s32.totalorder %s746_s25, %s746_s25 }
  0x27   :  { %p753_p4 = por %p752_p3, %p751_p2 }
  0x29   :  { %p754_p5 = pnand %p753_p4, %p747_p1 }
  0x2b   :  { %757 = shalt.err (!%p754_p5)
}
  0x2c   :  { %32 = dma.hbm_to_vmem [thread:$0]  %s1013_s0, 128, %s30_s21, [#allocation3]  }
  0x2d   :  { %s854_s28 = smov [#allocation7]   ;;  %s855_s30 = smov [#allocation10]  }
  0x2e   :  { %s48_s29 = sshll.u32 %s854_s28, 4  ;;  %s72_s14 = sshll.u32 %s855_s30, 4  ;;  %s49_s29 = int_to_ptr.vmem [resolvable:$true] %s48_s29  ;;  %s73_s14 = int_to_ptr.vmem [resolvable:$true] %s72_s14 }
  0x2f   :  { %s766_s15 = scalar_lea.vmem %s49_s29, 384  ;;  %p771_p7 = scmp.lt.s32.totalorder %s49_s29, %s49_s29 }
  0x30   :  { %p767_p6 = scmp.ne.s32.totalorder %s49_s29, %s766_s15  ;;  %p772_p8 = scmp.lt.s32.totalorder %s766_s15, %s766_s15 }
  0x32   :  { %p773_p9 = por %p772_p8, %p771_p7 }
  0x34   :  { %p774_p10 = pnand %p773_p9, %p767_p6 }
  0x36   :  { %777 = shalt.err (!%p774_p10)
}
  0x37   :  { %54 = dma.hbm_to_vmem [thread:$0]  %s1015_s2, 384, %s49_s29, [#allocation6], %s852_s1, %s852_s1, %s853_s23  }
  0x38   :  { %s786_s0 = scalar_lea.vmem %s73_s14, 512  ;;  %p791_p12 = scmp.lt.s32.totalorder %s73_s14, %s73_s14 }
  0x39   :  { %p787_p11 = scmp.ne.s32.totalorder %s73_s14, %s786_s0  ;;  %p792_p13 = scmp.lt.s32.totalorder %s786_s0, %s786_s0 }
  0x3b   :  { %p793_p0 = por %p792_p13, %p791_p12 }
  0x3d   :  { %p794_p1 = pnand %p793_p0, %p787_p11 }
  0x3f   :  { %797 = shalt.err (!%p794_p1)
}
  0x40   :  { %78 = dma.hbm_to_vmem [thread:$0]  %s1018_s5, 512, %s73_s14, [#allocation9], %s852_s1, %s852_s1, %s853_s23  }
  0x41   :  { %s856_s19 = smov [#allocation13]  }
  0x42   :  { %s100_s20 = sshll.u32 %s856_s19, 4  ;;  %s101_s20 = int_to_ptr.vmem [resolvable:$true] %s100_s20 }
  0x43   :  { %s806_s21 = scalar_lea.vmem %s101_s20, 512  ;;  %p811_p3 = scmp.lt.s32.totalorder %s101_s20, %s101_s20 }
  0x44   :  { %p807_p2 = scmp.ne.s32.totalorder %s101_s20, %s806_s21  ;;  %p812_p4 = scmp.lt.s32.totalorder %s806_s21, %s806_s21 }
  0x46   :  { %p813_p5 = por %p812_p4, %p811_p3 }
  0x48   :  { %p814_p6 = pnand %p813_p5, %p807_p2 }
  0x4a   :  { %817 = shalt.err (!%p814_p6)
}
  0x4b   :  { %106 = dma.hbm_to_vmem [thread:$0]  %s1022_s9, 512, %s101_s20, [#allocation12], %s852_s1, %s852_s1, %s853_s23  }
  0x4c   :  { %838 = dma.done.wait [#allocation3], 128  }
  0x4d   :  { %839 = vsyncadd [#allocation3], 4294967168 }
  0x4e   :  { %840 = dma.done.wait [#allocation6], 512  }
  0x4f   :  { %841 = vsyncadd [#allocation6], 4294966784 }
  0x50   :  { %842 = dma.done.wait [#allocation9], 640  }
  0x51   :  { %843 = vsyncadd [#allocation9], 4294966656 }
  0x52   :  { %844 = dma.done.wait [#allocation12], 1024  }
  0x53   :  { %845 = vsyncadd [#allocation12], 4294966272  ;;  %v857_v0 = vmov 0.0   ;;  %vm858_vm0 = vmmov 0   ;;  %vm140_vm1 = vcmask 64512   ;;  %v139_v1 = vld [vmem:[#allocation8] sm:$0xff] }
  0x54   :  { %619 = vmatprep.subr.mxu1 %v857_v0  ;;  %621 = vmatprep.mubr.msk.f32.mxu1 %vm858_vm0, %v857_v0  ;;  %v138_v2 = vld [vmem:[#allocation5] sm:$0xff]  ;;  %v137_v3 = vld [vmem:[#allocation7 + $0x10] sm:$0xff]  ;;  %v136_v4 = vld [vmem:[#allocation7 + $0x8] sm:$0xff]  ;;  %vm214_vm2 = vcmask 195584   ;;  %vm308_vm3 = vcmask 261120  }
  0x55   :  { %633 = vmatprep.subr.mxu0 %v857_v0  ;;  %641 = vmatprep.mubr.msk.f32.mxu0 %vm858_vm0, %v857_v0  ;;  %v135_v5 = vld [vmem:[#allocation7] sm:$0xff]  ;;  %v134_v6 = vld [vmem:[#allocation2] sm:$0xff]  ;;  %v300_v7 = vld [vmem:[#allocation10 + $0x18] sm:$0xff] }
  0x56   :  { %620 = vmatpush3.msra.mxu1 %v139_v1  ;;  %634 = vmatpush3.msra.mxu0 %v300_v7  ;;  %v299_v8 = vld [vmem:[#allocation10 + $0x10] sm:$0xff]  ;;  %v298_v9 = vld [vmem:[#allocation10 + $0x8] sm:$0xff]  ;;  %v297_v10 = vld [vmem:[#allocation10] sm:$0xff] }
  0x57   :  { %622 = vmatmul.mubr.msk.f32.vlgmr.msra.gmra.mxu1 %vm140_vm1, %v138_v2  ;;  %624 = vmatprep.subr.mxu1 %v857_v0  ;;  %v386_v11 = vld [vmem:[#allocation11 + $0x18] sm:$0xff]  ;;  %v589_v15 = vld [vmem:[%s1017_s4] ss:$0 sm:$0xff]  ;;  %v384_v21 = vld [vmem:[#allocation11 + $0x8] sm:$0xff] }
  0x58   :  { %625 = vmatpush3.msra.mxu1 %v137_v3  ;;  %630 = vmatprep.mubr.msk.f32.mxu1 %vm858_vm0, %v857_v0  ;;  %v385_v20 = vld [vmem:[#allocation11 + $0x10] sm:$0xff]  ;;  %v383_v22 = vld [vmem:[#allocation11] sm:$0xff]  ;;  %v471_v23 = vld [vmem:[#allocation13 + $0x18] sm:$0xff] }
  0x59   :  { %626 = vmatprep.subr.mxu1 %v857_v0  ;;  %635 = vmatprep.subr.mxu0 %v857_v0  ;;  %v590_v24 = vld [vmem:[%s1019_s6] ss:$0 sm:$0xff]  ;;  %v469_v30 = vld [vmem:[#allocation13 + $0x8] sm:$0xff]  ;;  %v468_v31 = vld [vmem:[#allocation13] sm:$0xff] }
  0x5a   :  { %627 = vmatpush3.msra.mxu1 %v136_v4  ;;  %636 = vmatpush3.msra.mxu0 %v299_v8  ;;  %v470_v29 = vld [vmem:[#allocation13 + $0x10] sm:$0xff] }
  0x5b   :  { %628 = vmatprep.subr.mxu1 %v857_v0  ;;  %637 = vmatprep.subr.mxu0 %v857_v0  ;;  %v592_v32 = vld [vmem:[%s1021_s8] ss:$0 sm:$0xff]  ;;  %s859_s8 = smov [#allocation14]  }
  0x5c   :  { %629 = vmatpush3.msra.mxu1 %v135_v5  ;;  %638 = vmatpush3.msra.mxu0 %v298_v9  ;;  %v594_v37 = vld [vmem:[%s1023_s10] ss:$0 sm:$0xff]  ;;  %s575_s29 = sshll.u32 %s859_s8, 4  ;;  %s576_s29 = int_to_ptr.vmem [resolvable:$true] %s575_s29 }
  0x5d   :  { %631 = vmatmul.mubr.msk.f32.vlgmr.msra.gmra.mxu1 %vm214_vm2, %v134_v6  ;;  %644 = vmatprep.subr.mxu1 %v857_v0  ;;  %v596_v39 = vld [vmem:[%s1024_s11] ss:$0 sm:$0xff]  ;;  %s818_s30 = scalar_lea.vmem %s576_s29, 128  ;;  %p823_p8 = scmp.lt.s32.totalorder %s576_s29, %s576_s29 }
  0x5e   :  { %652 = vmatprep.mubr.msk.f32.mxu1 %vm858_vm0, %v857_v0  ;;  %639 = vmatprep.subr.mxu0 %v857_v0  ;;  %v597_v42 = vld [vmem:[%s1025_s12] ss:$0 sm:$0xff]  ;;  %p819_p7 = scmp.ne.s32.totalorder %s576_s29, %s818_s30  ;;  %p824_p9 = scmp.lt.s32.totalorder %s818_s30, %s818_s30 }
  0x5f   :  { %640 = vmatpush3.msra.mxu0 %v297_v10  ;;  %645 = vmatpush3.msra.mxu1 %v386_v11 }
  0x60   :  { %655 = vmatprep.subr.mxu0 %v857_v0  ;;  %646 = vmatprep.subr.mxu1 %v857_v0  ;;  %p825_p10 = por %p824_p9, %p823_p8 }
  0x61   :  { %647 = vmatpush3.msra.mxu1 %v385_v20 }
  0x62   :  { %648 = vmatprep.subr.mxu1 %v857_v0  ;;  %p826_p11 = pnand %p825_p10, %p819_p7 }
  0x63   :  { %649 = vmatpush3.msra.mxu1 %v384_v21 }
  0x64   :  { %650 = vmatprep.subr.mxu1 %v857_v0 }
  0x65   :  { %651 = vmatpush3.msra.mxu1 %v383_v22 }
 0x117   :  { %v210_v12 = vpop.f32.mrf.mxu1 }
 0x119   :  { %v623_v13 = vpop.f32.mrf.mxu1 }
 0x11d   :  { %v284_v14 = vpop.f32.mrf.mxu1 }
 0x11e   :  { %v285_v16 = vadd.f32 %v284_v14, %v210_v12 }
 0x11f   :  { %v632_v17 = vpop.f32.mrf.mxu1 }
 0x120   :  { %v295_v18 = vadd.f32 %v589_v15, %v285_v16 }
 0x122   :  { %v296_v19 = vmax.f32 %v295_v18, 0.0 }
 0x124   :  { %642 = vmatmul.mubr.msk.f32.vlgmr.msra.gmra.mxu0 %vm308_vm3, %v296_v19 }
 0x125   :  { %663 = vmatprep.mubr.msk.f32.mxu0 %vm858_vm0, %v857_v0  ;;  %656 = vmatpush3.msra.mxu0 %v471_v23 }
 0x126   :  { %657 = vmatprep.subr.mxu0 %v857_v0 }
 0x127   :  { %658 = vmatpush3.msra.mxu0 %v470_v29 }
 0x128   :  { %659 = vmatprep.subr.mxu0 %v857_v0 }
 0x129   :  { %660 = vmatpush3.msra.mxu0 %v469_v30 }
 0x12a   :  { %661 = vmatprep.subr.mxu0 %v857_v0 }
 0x12b   :  { %662 = vmatpush3.msra.mxu0 %v468_v31 }
 0x1e4   :  { %v378_v25 = vpop.f32.mrf.mxu0 }
 0x1e5   :  { %v379_v26 = vadd.f32 %v590_v24, %v378_v25 }
 0x1e6   :  { %v643_v27 = vpop.f32.mrf.mxu0 }
 0x1e7   :  { %v382_v28 = vmax.f32 %v379_v26, 0.0 }
 0x1e9   :  { %653 = vmatmul.mubr.msk.f32.vlgmr.msra.gmra.mxu1 %vm308_vm3, %v382_v28 }
 0x2a9   :  { %v463_v33 = vpop.f32.mrf.mxu1 }
 0x2aa   :  { %v464_v34 = vadd.f32 %v592_v32, %v463_v33 }
 0x2ab   :  { %v654_v35 = vpop.f32.mrf.mxu1 }
 0x2ac   :  { %v467_v36 = vmax.f32 %v464_v34, 0.0 }
 0x2ae   :  { %664 = vmatmul.mubr.msk.f32.vlgmr.msra.gmra.mxu0 %vm308_vm3, %v467_v36 }
 0x36e   :  { %v548_v38 = vpop.f32.mrf.mxu0 }
 0x36f   :  { %v549_v40 = vadd.f32 %v594_v37, %v548_v38 }
 0x370   :  { %v665_v41 = vpop.f32.mrf.mxu0 }
 0x371   :  { %v559_v43 = vmax.f32 %v549_v40, %v596_v39 }
 0x373   :  { %v567_v44 = vmin.f32 %v559_v43, %v597_v42 }
 0x375   :  { %568 = vst [vmem:[#allocation14] sm:$0xff] %v567_v44 }
 0x376   :  { %829 = shalt.err (!%p826_p11)
}
 0x377   :  { %578 = dma.vmem_to_hbm [thread:$0]  %s576_s29, 128, %s1026_s13, [#allocation4]  }
 0x378   :  { %846 = dma.done.wait [#allocation4], 128  }
 0x379   :  { %847 = vsyncadd [#allocation4], 4294967168 }
 0x37a   :  { %582 = vsyncpa [#allocation3], 1 }
 0x37b   :  { %583 = vsyncpa [#allocation6], 1 }
 0x37c   :  { %584 = vsyncpa [#allocation9], 1 }
 0x37d   :  { %585 = vsyncpa [#allocation12], 1 }
 0x37e   :  { %586 = vsyncpa [#allocation4], 1 }

</bundles_post_ra>
